<compile_context>
chip_gen: v6e
topology: v6e:2x2x1
jax: 0.10.0
libtpu: 0.0.40
codegen_flags: <defaults>
</compile_context>

<pallas_src>
import jax
import jax.numpy as jnp
from jax.experimental import pallas as pl
from jax.experimental.pallas import tpu as pltpu


# ---------------------------------------------------------------------------
# Kernels
# ---------------------------------------------------------------------------
def _actor_kernel_batched(state_ref, wt_ref, b_ref, out_ref):
    """Batched branch: out = 5 * (state @ W^T + b) / state[:, 0:1]."""
    s = state_ref[...]                                               # (TB, D)
    x = jnp.dot(s, wt_ref[...], preferred_element_type=jnp.float32)  # (TB, N)
    x = x + b_ref[...]                                               # (1, N) broadcast
    # Fused epilogue: one reciprocal on a (TB,1) column + one (TB,N) multiply.
    scale = 5.0 * pl.reciprocal(s[:, 0:1], approx=False)
    out_ref[...] = x * scale


def _actor_kernel_1d(s0_ref, state_ref, wt_ref, b_ref, out_ref):
    """Unbatched branch: out = 5 * state[0] / (state @ W^T + b)."""
    s = state_ref[...]                                               # (1, D)
    x = jnp.dot(s, wt_ref[...], preferred_element_type=jnp.float32)  # (1, N)
    x = x + b_ref[...]
    s0 = s0_ref[0, 0]                                                # scalar from SMEM
    out_ref[...] = (5.0 * s0) * pl.reciprocal(x, approx=False)


# ---------------------------------------------------------------------------
# pallas_call wrappers
# ---------------------------------------------------------------------------
_VMEM_SPEC = pl.BlockSpec(memory_space=pltpu.MemorySpace.VMEM)
_SMEM_SPEC = pl.BlockSpec(memory_space=pltpu.MemorySpace.SMEM)

_TILE_B = 256  # row-tile for the large-batch path


def _call_single_batched(state, w_t, b2d):
    """Small batch: whole problem is one tile -> no grid at all."""
    B, _ = state.shape
    N = w_t.shape[1]
    return pl.pallas_call(
        _actor_kernel_batched,
        out_shape=jax.ShapeDtypeStruct((B, N), jnp.float32),
        in_specs=[_VMEM_SPEC, _VMEM_SPEC, _VMEM_SPEC],
        out_specs=_VMEM_SPEC,
    )(state, w_t, b2d)


def _call_tiled_batched(state, w_t, b2d, tb):
    """Large batch: tile rows; W/bias stay VMEM-resident; parallel grid axis
    lets v7x split rows across its two TensorCores."""
    B, D = state.shape
    N = w_t.shape[1]
    return pl.pallas_call(
        _actor_kernel_batched,
        out_shape=jax.ShapeDtypeStruct((B, N), jnp.float32),
        grid=(B // tb,),
        in_specs=[
            pl.BlockSpec((tb, D), lambda i: (i, 0)),
            pl.BlockSpec((D, N), lambda i: (0, 0)),
            pl.BlockSpec((1, N), lambda i: (0, 0)),
        ],
        out_specs=pl.BlockSpec((tb, N), lambda i: (i, 0)),
        compiler_params=pltpu.CompilerParams(
            dimension_semantics=("parallel",)),
    )(state, w_t, b2d)


def _call_1d(state2d, s0, w_t, b2d):
    N = w_t.shape[1]
    return pl.pallas_call(
        _actor_kernel_1d,
        out_shape=jax.ShapeDtypeStruct((1, N), jnp.float32),
        in_specs=[_SMEM_SPEC, _VMEM_SPEC, _VMEM_SPEC, _VMEM_SPEC],
        out_specs=_VMEM_SPEC,
    )(s0, state2d, w_t, b2d)


@jax.jit
def actor_forward(state, w_t, b2d):
    """Pallas implementation of ActorNetwork.forward.

    state: (B, D) or (D,) float32
    w_t:   (D, N) float32   -- pre-transposed Linear weight (see prepare_params)
    b2d:   (1, N) float32   -- pre-reshaped Linear bias
    """
    if state.ndim == 1:
        s2 = state.reshape(1, -1)
        s0 = state[0:1].reshape(1, 1)           # scalar divisor -> SMEM
        out = _call_1d(s2, s0, w_t, b2d)
        return out[0]                           # (N,)
    B = state.shape[0]
    if B >= 2 * _TILE_B and B % _TILE_B == 0:
        return _call_tiled_batched(state, w_t, b2d, _TILE_B)
    return _call_single_batched(state, w_t, b2d)
    # TODO(synk): for very large batches, pad N up to a multiple of 128 and
    # slice back, so the output store is lane-dense (vst vs vst.msk).


# ---------------------------------------------------------------------------
# Parameter init (mirrors the PyTorch __init__) + one-time layout prep
# ---------------------------------------------------------------------------
def init_params(key, input_dim, n_actions):
    """PyTorch layout: weight (n_actions, input_dim), bias (n_actions,)."""
    # f1 = 1 / sqrt(fc1.weight.size()[0]) = 1 / sqrt(n_actions)
    f1 = 1.0 / jnp.sqrt(jnp.float32(n_actions))
    kw, kb = jax.random.split(key)
    w = jax.random.uniform(kw, (n_actions, input_dim), jnp.float32, -f1, f1)
    b = jax.random.uniform(kb, (n_actions,), jnp.float32, -f1, f1)
    return w, b


def prepare_params(w, b):
    """One-time conversion (outside the per-call path): (N,D)->(D,N), (N,)->(1,N)."""
    return jnp.asarray(w).T, jnp.asarray(b).reshape(1, -1)


# ---------------------------------------------------------------------------
# Main
# ---------------------------------------------------------------------------
if __name__ == "__main__":
    key = jax.random.PRNGKey(0)
    k_state, k_params, k_big = jax.random.split(key, 3)

    B, D, N = 8, 32, 16                    # batch, input_dim, n_actions
    # Keep state[:, 0] away from zero (it is a divisor in the forward pass).
    state = jax.random.uniform(k_state, (B, D), jnp.float32, 0.5, 1.5)
    w, b = init_params(k_params, D, N)
    w_t, b2d = prepare_params(w, b)        # hoisted out of the call path

    # --- small-batch (no-grid) path ------------------------------------------
    out = jax.block_until_ready(actor_forward(state, w_t, b2d))
    ref = 5.0 * (state @ w_t + b) / state[:, 0:1]
    assert out.shape == (B, N)
    assert jnp.allclose(out, ref, rtol=1e-5, atol=1e-5), "batched mismatch vs reference"

    # --- 1-D (unbatched) path -------------------------------------------------
    s1 = state[0]
    out1 = jax.block_until_ready(actor_forward(s1, w_t, b2d))
    ref1 = 5.0 * s1[0] / (s1 @ w_t + b)
    assert out1.shape == (N,)
    assert jnp.allclose(out1, ref1, rtol=1e-5, atol=1e-5), "1d mismatch vs reference"

    # --- large-batch tiled (parallel grid) path -------------------------------
    Bb = 2 * _TILE_B
    state_big = jax.random.uniform(k_big, (Bb, D), jnp.float32, 0.5, 1.5)
    out_big = jax.block_until_ready(actor_forward(state_big, w_t, b2d))
    ref_big = 5.0 * (state_big @ w_t + b) / state_big[:, 0:1]
    assert out_big.shape == (Bb, N)
    assert jnp.allclose(out_big, ref_big, rtol=1e-5, atol=1e-5), "tiled mismatch vs reference"

    print("KERNEL_OK")
</pallas_src>

<mosaic_0001>
module attributes {stable_mosaic.version = 11 : i64} {
  func.func @_actor_kernel_batched(%arg0: memref<8x32xf32, #tpu.memory_space<vmem>>, %arg1: memref<32x16xf32, #tpu.memory_space<vmem>>, %arg2: memref<1x16xf32, #tpu.memory_space<vmem>>, %arg3: memref<8x16xf32, #tpu.memory_space<vmem>>) attributes {dimension_semantics = [], scalar_prefetch = 0 : i64, scratch_operands = 0 : i64, tpu.core_type = #tpu.core_type<tc>} {
    %c0 = arith.constant 0 : index
    %c0_0 = arith.constant 0 : index
    %0 = vector.load %arg0[%c0, %c0_0] : memref<8x32xf32, #tpu.memory_space<vmem>>, vector<8x32xf32>
    %c0_1 = arith.constant 0 : index
    %c0_2 = arith.constant 0 : index
    %1 = vector.load %arg1[%c0_1, %c0_2] : memref<32x16xf32, #tpu.memory_space<vmem>>, vector<32x16xf32>
    %cst = arith.constant dense<0.000000e+00> : vector<8x16xf32>
    %2 = tpu.matmul %0, %1, %cst {dimension_numbers = #tpu.dot_dimension_numbers<[1], [0], [0], [1], [0, 0, 1, 1], [], []>} : vector<8x32xf32>, vector<32x16xf32>, vector<8x16xf32> -> vector<8x16xf32>
    %c0_3 = arith.constant 0 : index
    %c0_4 = arith.constant 0 : index
    %3 = vector.load %arg2[%c0_3, %c0_4] : memref<1x16xf32, #tpu.memory_space<vmem>>, vector<1x16xf32>
    %4 = vector.broadcast %3 : vector<1x16xf32> to vector<8x16xf32>
    %5 = arith.addf %2, %4 : vector<8x16xf32>
    %6 = vector.extract_strided_slice %0 {offsets = [0, 0], sizes = [8, 1], strides = [1, 1]} : vector<8x32xf32> to vector<8x1xf32>
    %7 = tpu.reciprocal %6 : vector<8x1xf32> -> vector<8x1xf32>
    %cst_5 = arith.constant 5.000000e+00 : f32
    %8 = vector.broadcast %cst_5 : f32 to vector<8x1xf32>
    %9 = arith.mulf %8, %7 : vector<8x1xf32>
    %10 = vector.broadcast %9 : vector<8x1xf32> to vector<8x16xf32>
    %11 = arith.mulf %5, %10 : vector<8x16xf32>
    %c0_6 = arith.constant 0 : index
    %c0_7 = arith.constant 0 : index
    %12 = vector.load %arg3[%c0_6, %c0_7] : memref<8x16xf32, #tpu.memory_space<vmem>>, vector<8x16xf32>
    tpu.vector_store %arg3[%c0_6, %c0_7], %11 {strides = array<i32>} : memref<8x16xf32, #tpu.memory_space<vmem>>, vector<8x16xf32>,
    return
  }
}

</mosaic_0001>

<bundles_post_ra>
// kernel: actor_forward.1
= control target key start
LH: loop header
LB: loop body
LE: loop exit
PB: predicated region body
PF: predicated region fallthrough
CT: control target
= control target key end

     0   :  { %v172_v1 = vmov 0.0   ;;  %vm173_vm0 = vmmov 0   ;;  %v174_v4 = vmov 0   ;;  %s217_s0 = inlined_call_operand.vmem [shape: f32[8,32], index: 0, kind: input, shape index: {}]   ;;  %s218_s1 = inlined_call_operand.vmem [shape: f32[32,16], index: 1, kind: input, shape index: {}]   ;;  %s219_s2 = inlined_call_operand.vmem [shape: f32[1,16], index: 2, kind: input, shape index: {}]   ;;  %s220_s3 = inlined_call_operand.hbm [shape: f32[8,16], index: 3, kind: output, shape index: {}]  }
   0x1   :  { %v19_v0 = vld [vmem:[%s218_s1 + $0x18] sm:$0xff]  ;;  %132 = vmatprep.subr.mxu0 %v172_v1  ;;  %v18_v2 = vld [vmem:[%s218_s1 + $0x10] sm:$0xff]  ;;  %140 = vmatprep.mubr.msk.f32.mxu0 %vm173_vm0, %v172_v1  ;;  %v15_v3 = vld [vmem:[%s217_s0] sm:$0xff] }
   0x2   :  { %133 = vmatpush3.msra.mxu0 %v19_v0  ;;  %148 = vrcp.f32 %v15_v3  ;;  %147 = vset.pattern.permute.xlu0 %v174_v4 }
   0x3   :  { %8 = vsyncpa [#allocation3], 0  ;;  %134 = vmatprep.subr.mxu0 %v172_v1  ;;  %v17_v5 = vld [vmem:[%s218_s1 + $0x8] sm:$0xff]  ;;  %v16_v6 = vld [vmem:[%s218_s1] sm:$0xff]  ;;  %vm27_vm1 = vcmask 261120   ;;  %s175_s23 = smov [#allocation2]  }
   0x4   :  { %135 = vmatpush3.msra.mxu0 %v18_v2  ;;  %v125_v9 = vld [vmem:[%s219_s2] ss:$0 sm:$0xff]  ;;  %s117_s24 = sshll.u32 %s175_s23, 4  ;;  %vm109_vm2 = vcmask 130048   ;;  %s118_s24 = int_to_ptr.vmem [resolvable:$true] %s117_s24 }
   0x5   :  { %136 = vmatprep.subr.mxu0 %v172_v1  ;;  %s150_s1 = scalar_lea.vmem %s118_s24, 128  ;;  %p155_p1 = scmp.lt.s32.totalorder %s118_s24, %s118_s24 }
   0x6   :  { %137 = vmatpush3.msra.mxu0 %v17_v5  ;;  %p151_p0 = scmp.ne.s32.totalorder %s118_s24, %s150_s1  ;;  %p156_p2 = scmp.lt.s32.totalorder %s150_s1, %s150_s1 }
   0x7   :  { %138 = vmatprep.subr.mxu0 %v172_v1 }
   0x8   :  { %139 = vmatpush3.msra.mxu0 %v16_v6  ;;  %p157_p3 = por %p156_p2, %p155_p1 }
   0x9   :  { %141 = vmatmul.mubr.msk.f32.vlgmr.msra.gmra.mxu0 %vm27_vm1, %v15_v3 }
   0xa   :  { %p158_p4 = pnand %p157_p3, %p151_p0 }
   0xf   :  { %v149_v7 = vpop.eup %148 }
  0x10   :  { %v102_v8 = vmul.f32 5.0, %v149_v7 }
  0x12   :  { %105 = vperm.xlu0 %147, %v102_v8  }
  0x8d   :  { %v106_v11 = vpop.permute.xlu0 %105 }
  0xc9   :  { %v97_v10 = vpop.f32.mrf.mxu0 }
  0xca   :  { %v98_v12 = vadd.f32 %v125_v9, %v97_v10 }
  0xcb   :  { %v142_v13 = vpop.f32.mrf.mxu0 }
  0xcc   :  { %v108_v14 = vmul.f32 %v106_v11, %v98_v12 }
  0xce   :  { %110 = vst.msk [vmem:[#allocation2] sm:$0xff] %vm109_vm2, %v108_v14 }
  0xcf   :  { %161 = shalt.err (!%p158_p4)
}
  0xd0   :  { %120 = dma.vmem_to_hbm [thread:$0]  %s118_s24, 128, %s220_s3, [#allocation3]  }
  0xd1   :  { %170 = dma.done.wait [#allocation3], 128  }
  0xd2   :  { %171 = vsyncadd [#allocation3], 4294967168 }
  0xd3   :  { %124 = vsyncpa [#allocation3], 1 }

</bundles_post_ra>
